<compile_context>
chip_gen: v5e
topology: v5e:2x2
jax: 0.10.0
libtpu: 0.0.40
codegen_flags: <defaults>
</compile_context>

<pallas_src>
import functools

import jax
import jax.numpy as jnp
from jax.experimental import pallas as pl
from jax.experimental.pallas import tpu as pltpu


# ----------------- Pallas kernel -----------------
def _label_smoothing_kernel(x_ref, tgt_ref, loss_ref, td_ref, *,
                            size, padding_idx, smoothing, confidence):
    x = x_ref[...].astype(jnp.float32)          # (N, V) log-probabilities
    tgt = tgt_ref[...]                          # (N, 1) int32 labels
    n, v = x.shape

    col = jax.lax.broadcasted_iota(jnp.int32, (n, v), dimension=1)

    # fill_(smoothing / (size - 2)) then scatter_(1, target, confidence)
    smooth_val = smoothing / (size - 2)
    true_dist = jnp.where(col == tgt, confidence, smooth_val)
    # true_dist[:, padding_idx] = 0
    true_dist = jnp.where(col == padding_idx, 0.0, true_dist)
    # true_dist.index_fill_(0, rows where target == padding_idx, 0)
    true_dist = jnp.where(tgt == padding_idx, 0.0, true_dist)

    # KLDivLoss(size_average=False): sum over all elements of td * (log(td) - x),
    # with the convention 0 * log(0) = 0 (masked via where; log kept finite).
    safe_log = jnp.log(jnp.maximum(true_dist, 1e-30))
    terms = jnp.where(true_dist > 0.0, true_dist * (safe_log - x), 0.0)

    loss = jnp.sum(terms, axis=-1, keepdims=True)   # lane reduce    -> (N, 1)
    loss = jnp.sum(loss, axis=0, keepdims=True)     # sublane reduce -> (1, 1)

    loss_ref[...] = loss
    td_ref[...] = true_dist.astype(td_ref.dtype)


def label_smoothing(x, target, *, size, padding_idx, smoothing):
    """x: (N, size) log-probs, target: (N,) int labels.
    Returns (loss_sum, true_dist) — mirrors LabelSmoothing.forward (loss) and the
    module's cached self.true_dist."""
    n, v = x.shape
    assert v == size
    confidence = 1.0 - smoothing

    kern = functools.partial(
        _label_smoothing_kernel,
        size=size, padding_idx=padding_idx,
        smoothing=smoothing, confidence=confidence)

    loss, true_dist = pl.pallas_call(
        kern,
        out_shape=(jax.ShapeDtypeStruct((1, 1), jnp.float32),
                   jax.ShapeDtypeStruct((n, v), jnp.float32)),
        in_specs=[pl.BlockSpec(memory_space=pltpu.MemorySpace.VMEM),
                  pl.BlockSpec(memory_space=pltpu.MemorySpace.VMEM)],
        out_specs=(pl.BlockSpec(memory_space=pltpu.MemorySpace.VMEM),
                   pl.BlockSpec(memory_space=pltpu.MemorySpace.VMEM)),
    )(x.astype(jnp.float32), target.astype(jnp.int32).reshape(n, 1))

    return loss[0, 0], true_dist


# ----------------- pure-JAX reference -----------------
def _reference(x, target, *, size, padding_idx, smoothing):
    confidence = 1.0 - smoothing
    n, v = x.shape
    td = jnp.full((n, v), smoothing / (size - 2), dtype=jnp.float32)
    td = td.at[jnp.arange(n), target].set(confidence)
    td = td.at[:, padding_idx].set(0.0)
    td = jnp.where((target == padding_idx)[:, None], 0.0, td)
    terms = jnp.where(td > 0, td * (jnp.log(jnp.maximum(td, 1e-30)) - x), 0.0)
    return jnp.sum(terms), td


# ----------------- main -----------------
if __name__ == "__main__":
    key = jax.random.PRNGKey(0)
    k_logits, k_tgt = jax.random.split(key)

    B, S, VOCAB = 2, 8, 32          # N = B*S tokens, vocab (= `size`) = 32
    PAD, SMOOTH = 0, 0.1
    N = B * S

    logits = jax.random.normal(k_logits, (N, VOCAB), dtype=jnp.float32)
    x = jax.nn.log_softmax(logits, axis=-1)         # KLDivLoss expects log-probs
    target = jax.random.randint(k_tgt, (N,), 0, VOCAB)
    target = target.at[3].set(PAD)                  # exercise the padding-row path

    loss, true_dist = jax.block_until_ready(
        label_smoothing(x, target, size=VOCAB, padding_idx=PAD, smoothing=SMOOTH))

    ref_loss, ref_td = _reference(x, target, size=VOCAB,
                                  padding_idx=PAD, smoothing=SMOOTH)

    assert true_dist.shape == (N, VOCAB)
    assert jnp.allclose(true_dist, ref_td, rtol=1e-6, atol=1e-6)
    assert jnp.allclose(loss, ref_loss, rtol=1e-5, atol=1e-5)
    print("KERNEL_OK")
</pallas_src>

<mosaic_0001>
module attributes {stable_mosaic.version = 11 : i64} {
  func.func @_label_smoothing_kernel(%arg0: memref<16x32xf32, #tpu.memory_space<vmem>>, %arg1: memref<16x1xi32, #tpu.memory_space<vmem>>, %arg2: memref<1x1xf32, #tpu.memory_space<vmem>>, %arg3: memref<16x32xf32, #tpu.memory_space<vmem>>) attributes {dimension_semantics = [], scalar_prefetch = 0 : i64, scratch_operands = 0 : i64, tpu.core_type = #tpu.core_type<tc>} {
    %c0 = arith.constant 0 : index
    %c0_0 = arith.constant 0 : index
    %0 = vector.load %arg0[%c0, %c0_0] : memref<16x32xf32, #tpu.memory_space<vmem>>, vector<16x32xf32>
    %c0_1 = arith.constant 0 : index
    %c0_2 = arith.constant 0 : index
    %1 = vector.load %arg1[%c0_1, %c0_2] : memref<16x1xi32, #tpu.memory_space<vmem>>, vector<16x1xi32>
    %2 = tpu.iota {dimensions = array<i32: 1>} : vector<16x32xi32>
    %3 = vector.broadcast %1 : vector<16x1xi32> to vector<16x32xi32>
    %4 = arith.cmpi eq, %2, %3 : vector<16x32xi32>
    %cst = arith.constant 0.899999976 : f32
    %cst_3 = arith.constant 0.00333333341 : f32
    %5 = vector.broadcast %cst : f32 to vector<16x32xf32>
    %6 = vector.broadcast %cst_3 : f32 to vector<16x32xf32>
    %7 = arith.select %4, %5, %6 : vector<16x32xi1>, vector<16x32xf32>
    %c0_i32 = arith.constant 0 : i32
    %8 = vector.broadcast %c0_i32 : i32 to vector<16x32xi32>
    %9 = arith.cmpi eq, %2, %8 : vector<16x32xi32>
    %cst_4 = arith.constant 0.000000e+00 : f32
    %10 = vector.broadcast %cst_4 : f32 to vector<16x32xf32>
    %11 = arith.select %9, %10, %7 : vector<16x32xi1>, vector<16x32xf32>
    %c0_i32_5 = arith.constant 0 : i32
    %12 = vector.broadcast %c0_i32_5 : i32 to vector<16x1xi32>
    %13 = arith.cmpi eq, %1, %12 : vector<16x1xi32>
    %cst_6 = arith.constant 0.000000e+00 : f32
    %14 = vector.shape_cast %13 : vector<16x1xi1> to vector<16x1xi1>
    %15 = vector.broadcast %14 : vector<16x1xi1> to vector<16x32xi1>
    %16 = vector.broadcast %cst_6 : f32 to vector<16x32xf32>
    %17 = arith.select %15, %16, %11 : vector<16x32xi1>, vector<16x32xf32>
    %cst_7 = arith.constant 1.000000e-30 : f32
    %18 = vector.broadcast %cst_7 : f32 to vector<16x32xf32>
    %19 = arith.maximumf %17, %18 : vector<16x32xf32>
    %20 = math.log %19 : vector<16x32xf32>
    %cst_8 = arith.constant 0.000000e+00 : f32
    %21 = vector.broadcast %cst_8 : f32 to vector<16x32xf32>
    %22 = arith.cmpf ogt, %17, %21 : vector<16x32xf32>
    %23 = arith.subf %20, %0 : vector<16x32xf32>
    %24 = arith.mulf %17, %23 : vector<16x32xf32>
    %cst_9 = arith.constant 0.000000e+00 : f32
    %25 = vector.broadcast %cst_9 : f32 to vector<16x32xf32>
    %26 = arith.select %22, %24, %25 : vector<16x32xi1>, vector<16x32xf32>
    %cst_10 = arith.constant dense<0.000000e+00> : vector<16xf32>
    %27 = vector.multi_reduction <add>, %26, %cst_10 [1] : vector<16x32xf32> to vector<16xf32>
    %28 = vector.shape_cast %27 : vector<16xf32> to vector<16x1xf32>
    %cst_11 = arith.constant dense<0.000000e+00> : vector<1xf32>
    %29 = vector.multi_reduction <add>, %28, %cst_11 [0] : vector<16x1xf32> to vector<1xf32>
    %30 = vector.shape_cast %29 : vector<1xf32> to vector<1x1xf32>
    %c0_12 = arith.constant 0 : index
    %c0_13 = arith.constant 0 : index
    %31 = vector.load %arg2[%c0_12, %c0_13] : memref<1x1xf32, #tpu.memory_space<vmem>>, vector<1x1xf32>
    tpu.vector_store %arg2[%c0_12, %c0_13], %30 {strides = array<i32>} : memref<1x1xf32, #tpu.memory_space<vmem>>, vector<1x1xf32>,
    %c0_14 = arith.constant 0 : index
    %c0_15 = arith.constant 0 : index
    %32 = vector.load %arg3[%c0_14, %c0_15] : memref<16x32xf32, #tpu.memory_space<vmem>>, vector<16x32xf32>
    tpu.vector_store %arg3[%c0_14, %c0_15], %17 {strides = array<i32>} : memref<16x32xf32, #tpu.memory_space<vmem>>, vector<16x32xf32>,
    return
  }
}

</mosaic_0001>

<bundles_post_ra>
// kernel: tpu_custom_call.1
= control target key start
LH: loop header
LB: loop body
LE: loop exit
PB: predicated region body
PF: predicated region fallthrough
CT: control target
= control target key end

     0   :  { %9 = vsyncpa [#allocation3], 0  ;;  %v178_v1 = vmov 0   ;;  %s228_s0 = inlined_call_operand.vmem [shape: f32[16,32], index: 0, kind: input, shape index: {}]   ;;  %s229_s1 = inlined_call_operand.vmem [shape: s32[16,1], index: 1, kind: input, shape index: {}]   ;;  %s230_s2 = inlined_call_operand.hbm [shape: f32[1,1], index: 2, kind: output, shape index: {0}]   ;;  %s231_s3 = inlined_call_operand.hbm [shape: f32[16,32], index: 3, kind: output, shape index: {1}]  }
   0x1   :  { %v17_v0 = vld [vmem:[%s229_s1] sm:$0xff]  ;;  %120 = vset.pattern.permute.xlu0 %v178_v1  ;;  %121 = vset.pattern.permute.xlu1 %v178_v1 }
   0x2   :  { %vm34_vm0 = vcmp.eq.s32.totalorder %v17_v0, 0 }
   0x3   :  { %10 = vsyncpa [#allocation5], 0  ;;  %22 = vperm.xlu0 %120, %v17_v0   ;;  %v36_v2 = vsel %vm34_vm0, 1, %v178_v1  ;;  %v18_v3 = vld [vmem:[%s229_s1 + $0x8] sm:$0xff]  ;;  %v19_v5 = vlaneseq  ;;  %v179_v9 = vmov 0.0033333334  }
   0x4   :  { %39 = vperm.xlu1 %121, %v36_v2   ;;  %vm35_vm1 = vcmp.eq.s32.totalorder %v18_v3, 0  ;;  %vm62_vm5 = vcmask 261120   ;;  %v15_v21 = vld [vmem:[%s228_s0] sm:$0xff]  ;;  %v16_v28 = vld [vmem:[%s228_s0 + $0x8] sm:$0xff]  ;;  %s180_s19 = smov [#allocation4]   ;;  %s97_s23 = sshll.u32 %s231_s3, 4  ;;  %s98_s23 = int_to_ptr.hbm [resolvable:$true] %s97_s23 }
   0x5   :  { %v37_v4 = vsel %vm35_vm1, 1, %v178_v1  ;;  %v20_v6 = vand.u32 127, %v19_v5  ;;  %s95_s20 = sshll.u32 %s180_s19, 4  ;;  %s181_s24 = smov 128   ;;  %vm76_vm10 = vcmask 0   ;;  %s96_s20 = int_to_ptr.vmem [resolvable:$true] %s95_s20 }
   0x6   :  { %s182_s25 = smov 8   ;;  %s183_s0 = smov [#allocation2]  }
   0x7   :  { %vm31_vm2 = vcmp.eq.s32.totalorder %v20_v6, 0  ;;  %s85_s26 = sshll.u32 %s183_s0, 4  ;;  %s87_s29 = sshll.u32 %s230_s2, 4  ;;  %s86_s26 = int_to_ptr.vmem [resolvable:$true] %s85_s26  ;;  %s88_s29 = int_to_ptr.hbm [resolvable:$true] %s87_s29 }
   0xb   :  { %25 = vperm.xlu0 %120, %v18_v3  }
   0xc   :  { %42 = vperm.xlu1 %121, %v37_v4  }
  0x75   :  { %v23_v7 = vpop.permute.xlu0 %22 }
  0x76   :  { %vm27_vm3 = vcmp.eq.s32.totalorder %v20_v6, %v23_v7  ;;  %v40_v8 = vpop.permute.xlu1 %39 }
  0x77   :  { %v29_v10 = vsel %vm27_vm3, 0.9, %v179_v9  ;;  %vm44_vm4 = vcmp.eq.s32.totalorder %v40_v8, 1 }
  0x78   :  { %v32_v11 = vsel %vm31_vm2, 0.0, %v29_v10 }
  0x79   :  { %v46_v12 = vsel %vm44_vm4, 0.0, %v32_v11 }
  0x7a   :  { %v48_v13 = vmax.f32 %v46_v12, 1e-30  ;;  %78 = vst.msk [vmem:[#allocation4] sm:$0xff] %vm62_vm5, %v46_v12  ;;  %vm54_vm8 = vcmp.gt.f32.partialorder %v46_v12, 0.0 }
  0x7c   :  { %122 = vlog2.f32 %v48_v13 }
  0x7d   :  { %v26_v14 = vpop.permute.xlu0 %25 }
  0x7e   :  { %vm28_vm6 = vcmp.eq.s32.totalorder %v20_v6, %v26_v14  ;;  %v43_v15 = vpop.permute.xlu1 %42 }
  0x7f   :  { %v30_v16 = vsel %vm28_vm6, 0.9, %v179_v9  ;;  %vm45_vm7 = vcmp.eq.s32.totalorder %v43_v15, 1 }
  0x80   :  { %v33_v17 = vsel %vm31_vm2, 0.0, %v30_v16 }
  0x81   :  { %v47_v18 = vsel %vm45_vm7, 0.0, %v33_v17 }
  0x82   :  { %v123_v19 = vpop.eup %122  ;;  %v49_v20 = vmax.f32 %v47_v18, 1e-30  ;;  %79 = vst.msk [vmem:[#allocation4 + $0x8] sm:$0xff] %vm62_vm5, %v47_v18  ;;  %vm55_vm9 = vcmp.gt.f32.partialorder %v47_v18, 0.0 }
  0x83   :  { %v51_v22 = vmul.f32 0.6931472, %v123_v19  ;;  %103 = dma.vmem_to_hbm [thread:$0]  %s96_s20, 256, %s98_s23, [#allocation5], %s181_s24, %s181_s24, %s182_s25  }
  0x84   :  { %124 = vlog2.f32 %v49_v20 }
  0x85   :  { %v56_v23 = vsub.f32 %v51_v22, %v15_v21 }
  0x87   :  { %v58_v24 = vmul.f32 %v56_v23, %v46_v12 }
  0x89   :  { %v60_v25 = vsel %vm54_vm8, %v58_v24, 0.0 }
  0x8a   :  { %v125_v26 = vpop.eup %124  ;;  %v63_v27 = vsel %vm62_vm5, %v60_v25, 0.0 }
  0x8b   :  { %v53_v29 = vmul.f32 0.6931472, %v125_v26  ;;  %64 = vadd.xlane.f32.xlu2 %v63_v27 }
  0x8d   :  { %v57_v30 = vsub.f32 %v53_v29, %v16_v28 }
  0x8f   :  { %v59_v31 = vmul.f32 %v57_v30, %v47_v18 }
  0x91   :  { %v61_v32 = vsel %vm55_vm9, %v59_v31, 0.0 }
  0x92   :  { %v66_v33 = vsel %vm62_vm5, %v61_v32, 0.0 }
  0x93   :  { %67 = vadd.xlane.f32.xlu2 %v66_v33 }
  0xfe   :  { %v65_v34 = vpop.xlane.xlu2 %64 }
 0x106   :  { %v68_v35 = vpop.xlane.xlu2 %67 }
 0x107   :  { %v69_v36 = vadd.f32 %v68_v35, %v65_v34 }
 0x109   :  { %v70_v37 = vrot.slane %v69_v36, 4 }
 0x10b   :  { %v71_v38 = vadd.f32 %v70_v37, %v69_v36 }
 0x10d   :  { %v72_v39 = vrot.slane %v71_v38, 2 }
 0x10f   :  { %v73_v40 = vadd.f32 %v72_v39, %v71_v38 }
 0x111   :  { %v74_v41 = vrot.slane %v73_v40, 1 }
 0x113   :  { %v75_v42 = vadd.f32 %v74_v41, %v73_v40 }
 0x115   :  { %77 = vst.msk [vmem:[#allocation2] sm:$0x1] %vm76_vm10, %v75_v42 }
 0x116   :  { %90 = dma.vmem_to_hbm [thread:$0]  %s86_s26, 16, %s88_s29, [#allocation3]  }
 0x117   :  { %174 = dma.done.wait [#allocation3], 16  }
 0x118   :  { %175 = vsyncadd [#allocation3], 4294967280 }
 0x119   :  { %176 = dma.done.wait [#allocation5], 256  }
 0x11a   :  { %177 = vsyncadd [#allocation5], 4294967040 }
 0x11b   :  { %112 = vsyncpa [#allocation3], 1 }
 0x11c   :  { %113 = vsyncpa [#allocation5], 1 }

</bundles_post_ra>
